<compile_context>
chip_gen: v5e
topology: v5e:2x2
jax: 0.10.0
libtpu: 0.0.40
codegen_flags: <defaults>
</compile_context>

<pallas_src>
import jax
import jax.numpy as jnp
from jax.experimental import pallas as pl
from jax.experimental.pallas import tpu as pltpu

LANE = 128
SUBLANE = 8           # f32 sublane tile height
MAX_TILE_ROWS = 2048  # (2048,128) f32 block = 1 MiB / input / buffer
STRIP_ROWS = 256      # compute strip inside a tile (bounds live vreg working set)
NUM_CORES = 2         # leading "parallel" grid axis; both TCs on v7x, no-op elsewhere


def _round_up(x, m):
    return ((x + m - 1) // m) * m


def _make_kernel(tile_r, strip_r):
    """Focal-loss partial-sum kernel for one (tile_r, 128) block per grid step."""
    assert tile_r % strip_r == 0 and strip_r % SUBLANE == 0
    n_strips = tile_r // strip_r

    def kernel(x_ref, gt_ref, m_ref, loss_sum_ref, npos_sum_ref, acc_loss, acc_npos):
        i = pl.program_id(1)  # inner ("arbitrary") reduction axis

        @pl.when(i == 0)
        def _init():
            acc_loss[...] = jnp.zeros_like(acc_loss)
            acc_npos[...] = jnp.zeros_like(acc_npos)

        def _accumulate(row_start):
            x = x_ref[pl.ds(row_start, strip_r), :].astype(jnp.float32)   # raw logits
            gt = gt_ref[pl.ds(row_start, strip_r), :].astype(jnp.float32)
            m = m_ref[pl.ds(row_start, strip_r), :].astype(jnp.float32)

            # Numerically-stable log-sigmoid pieces; all finite for finite x.
            t = jnp.exp(-jnp.abs(x))                   # in (0, 1]
            lse = jnp.log(1.0 + t)                     # softplus(-|x|)
            log_pred = jnp.minimum(x, 0.0) - lse       # log(sigmoid(x))
            log_1m_pred = jnp.minimum(-x, 0.0) - lse   # log(1 - sigmoid(x))
            # sigmoid via one extra EUP exp instead of a VALU divide + sign-select.
            pred = jnp.exp(log_pred)

            is_pos = (gt == 1.0).astype(jnp.float32)
            # (1-gt)^4 is exactly 0 where gt == 1, so it also plays the role of
            # neg_inds (requires gt <= 1, true for CenterNet heatmaps).
            neg_w = (1.0 - gt) ** 4

            pos_l = log_pred * (1.0 - pred) ** 2 * is_pos
            neg_l = log_1m_pred * (pred * pred) * neg_w
            contrib = (pos_l + neg_l) * m              # mask applied once
            pos_inds = is_pos * m

            # Reduce each strip to a single vreg before the accumulator RMW.
            acc_loss[...] += jnp.sum(
                contrib.reshape(strip_r // SUBLANE, SUBLANE, LANE), axis=0)
            acc_npos[...] += jnp.sum(
                pos_inds.reshape(strip_r // SUBLANE, SUBLANE, LANE), axis=0)

        if n_strips == 1:
            _accumulate(0)
        else:
            def _body(j, carry):
                _accumulate(pl.multiple_of(j * strip_r, strip_r))
                return carry
            # Long bodies (~1k vector ops) amortize the scalar loop overhead.
            jax.lax.fori_loop(0, n_strips, _body, 0, unroll=False)

        @pl.when(i == pl.num_programs(1) - 1)
        def _finalize():
            loss_sum_ref[...] = jnp.sum(acc_loss[...], keepdims=True).reshape(1, 1, 1)
            npos_sum_ref[...] = jnp.sum(acc_npos[...], keepdims=True).reshape(1, 1, 1)

    return kernel


def focal_loss(output, target, mask):
    """Penalty-reduced focal loss; `output` are raw logits (sigmoid applied inside)."""
    assert output.shape == target.shape == mask.shape
    n = output.size  # static Python int
    assert n > 0

    # Sublane granularity: 8 for 32-bit inputs, 16 for 16-bit, 32 for 8-bit/bool.
    gran = SUBLANE
    for a in (output, target, mask):
        gran = max(gran, SUBLANE * max(1, 4 // jnp.dtype(a.dtype).itemsize))

    rows_min = pl.cdiv(n, LANE)
    rpc = _round_up(pl.cdiv(rows_min, NUM_CORES), gran)   # rows needed per core
    tiles_per_core = pl.cdiv(rpc, MAX_TILE_ROWS)
    tile_r = _round_up(pl.cdiv(rpc, tiles_per_core), gran)
    if tile_r > STRIP_ROWS:
        tile_r = _round_up(tile_r, STRIP_ROWS)            # strips tile the block exactly
    strip_r = min(STRIP_ROWS, tile_r)

    rows = NUM_CORES * tiles_per_core * tile_r
    n_pad = rows * LANE - n   # zero pad contributes exactly 0 to loss and num_pos

    def _slab(a):
        a = a.reshape(-1)          # row-major flatten, native dtype preserved
        if n_pad:
            a = jnp.pad(a, (0, n_pad))
        return a.reshape(rows, LANE)

    x2, t2, m2 = _slab(output), _slab(target), _slab(mask)

    kernel = _make_kernel(tile_r, strip_r)

    in_spec = pl.BlockSpec((tile_r, LANE),
                           lambda c, i, _t=tiles_per_core: (c * _t + i, 0))
    out_spec = pl.BlockSpec((1, 1, 1), lambda c, i: (c, 0, 0))

    part_loss, part_npos = pl.pallas_call(
        kernel,
        out_shape=(jax.ShapeDtypeStruct((NUM_CORES, 1, 1), jnp.float32),
                   jax.ShapeDtypeStruct((NUM_CORES, 1, 1), jnp.float32)),
        grid_spec=pltpu.PrefetchScalarGridSpec(
            num_scalar_prefetch=0,
            grid=(NUM_CORES, tiles_per_core),
            in_specs=[in_spec, in_spec, in_spec],
            out_specs=[out_spec, out_spec],
            scratch_shapes=[pltpu.VMEM((SUBLANE, LANE), jnp.float32),   # loss acc
                            pltpu.VMEM((SUBLANE, LANE), jnp.float32)],  # num_pos acc
        ),
        compiler_params=pltpu.CompilerParams(
            dimension_semantics=("parallel", "arbitrary")),
    )(x2, t2, m2)

    total = jnp.sum(part_loss)
    npos = jnp.sum(part_npos)
    # When num_pos == 0 the positive contribution is identically 0, so -total == -neg.
    return jnp.where(npos == 0.0, -total, -total / npos)


def _focal_loss_ref(output, target, mask):
    x = output.astype(jnp.float32)
    gt = target.astype(jnp.float32)
    m = mask.astype(jnp.float32)
    pred = jax.nn.sigmoid(x)
    log_pred = jax.nn.log_sigmoid(x)       # stable log(sigmoid(x))
    log_1m_pred = jax.nn.log_sigmoid(-x)   # stable log(1 - sigmoid(x))
    pos_inds = (gt == 1.0).astype(jnp.float32) * m
    neg_inds = (gt < 1.0).astype(jnp.float32) * m
    neg_w = (1.0 - gt) ** 4
    pos_loss = jnp.sum(log_pred * (1.0 - pred) ** 2 * pos_inds)
    neg_loss = jnp.sum(log_1m_pred * pred ** 2 * neg_w * neg_inds)
    num_pos = jnp.sum(pos_inds)
    return jnp.where(num_pos == 0.0, -neg_loss, -(pos_loss + neg_loss) / num_pos)


if __name__ == "__main__":
    key = jax.random.PRNGKey(0)
    k1, k2, k3 = jax.random.split(key, 3)

    B, C, H, W = 2, 4, 16, 16
    # Raw logits (the module applies sigmoid itself).
    output = jax.random.normal(k1, (B, C, H, W), dtype=jnp.float32)
    # Heatmap-style target: values in [0,1), with a few exact 1.0 "peaks".
    u = jax.random.uniform(k2, (B, C, H, W), dtype=jnp.float32)
    target = jnp.where(u > 0.97, 1.0, 0.95 * u)
    # Binary valid mask (float, as the module multiplies it with floats).
    mask = (jax.random.uniform(k3, (B, C, H, W)) > 0.2).astype(jnp.float32)

    loss = focal_loss(output, target, mask)
    jax.block_until_ready(loss)

    ref = _focal_loss_ref(output, target, mask)
    assert jnp.allclose(loss, ref, rtol=1e-5, atol=1e-5), (loss, ref)

    print("KERNEL_OK")
</pallas_src>

<mosaic_0001>
module attributes {stable_mosaic.version = 11 : i64} {
  func.func @kernel(%arg0: i32, %arg1: i32, %arg2: memref<8x128xf32, #tpu.memory_space<vmem>>, %arg3: memref<8x128xf32, #tpu.memory_space<vmem>>, %arg4: memref<8x128xf32, #tpu.memory_space<vmem>>, %arg5: memref<1x1x1xf32, #tpu.memory_space<vmem>>, %arg6: memref<1x1x1xf32, #tpu.memory_space<vmem>>, %arg7: memref<8x128xf32, #tpu.memory_space<vmem>>, %arg8: memref<8x128xf32, #tpu.memory_space<vmem>>) attributes {dimension_semantics = [#tpu.dimension_semantics<parallel>, #tpu.dimension_semantics<arbitrary>], iteration_bounds = array<i64: 2, 1>, scalar_prefetch = 0 : i64, scratch_operands = 2 : i64, tpu.core_type = #tpu.core_type<tc>, window_params = [{transform_indices = @transform_0, window_bounds = array<i64: 8, 128>}, {transform_indices = @transform_1, window_bounds = array<i64: 8, 128>}, {transform_indices = @transform_2, window_bounds = array<i64: 8, 128>}, {transform_indices = @transform_3, window_bounds = array<i64: 1, 1, 1>}, {transform_indices = @transform_4, window_bounds = array<i64: 1, 1, 1>}]} {
    %c0_i32 = arith.constant 0 : i32
    %0 = arith.cmpi eq, %arg1, %c0_i32 : i32
    %1 = arith.extui %0 : i1 to i32
    %c0_i32_0 = arith.constant 0 : i32
    %2 = arith.cmpi ne, %1, %c0_i32_0 : i32
    scf.if %2 {
      %cst_25 = arith.constant 0.000000e+00 : f32
      %54 = vector.broadcast %cst_25 : f32 to vector<8x128xf32>
      %c0_26 = arith.constant 0 : index
      %c0_27 = arith.constant 0 : index
      %55 = vector.load %arg7[%c0_26, %c0_27] : memref<8x128xf32, #tpu.memory_space<vmem>>, vector<8x128xf32>
      tpu.vector_store %arg7[%c0_26, %c0_27], %54 {strides = array<i32>} : memref<8x128xf32, #tpu.memory_space<vmem>>, vector<8x128xf32>,
      %cst_28 = arith.constant 0.000000e+00 : f32
      %56 = vector.broadcast %cst_28 : f32 to vector<8x128xf32>
      %c0_29 = arith.constant 0 : index
      %c0_30 = arith.constant 0 : index
      %57 = vector.load %arg8[%c0_29, %c0_30] : memref<8x128xf32, #tpu.memory_space<vmem>>, vector<8x128xf32>
      tpu.vector_store %arg8[%c0_29, %c0_30], %56 {strides = array<i32>} : memref<8x128xf32, #tpu.memory_space<vmem>>, vector<8x128xf32>,
    } else {
    }
    %c0 = arith.constant 0 : index
    %c0_1 = arith.constant 0 : index
    %3 = vector.load %arg2[%c0, %c0_1] : memref<8x128xf32, #tpu.memory_space<vmem>>, vector<8x128xf32>
    %c0_2 = arith.constant 0 : index
    %c0_3 = arith.constant 0 : index
    %4 = vector.load %arg3[%c0_2, %c0_3] : memref<8x128xf32, #tpu.memory_space<vmem>>, vector<8x128xf32>
    %c0_4 = arith.constant 0 : index
    %c0_5 = arith.constant 0 : index
    %5 = vector.load %arg4[%c0_4, %c0_5] : memref<8x128xf32, #tpu.memory_space<vmem>>, vector<8x128xf32>
    %6 = math.absf %3 : vector<8x128xf32>
    %cst = arith.constant 0.000000e+00 : f32
    %7 = vector.broadcast %cst : f32 to vector<8x128xf32>
    %8 = arith.subf %7, %6 : vector<8x128xf32>
    %9 = math.exp %8 : vector<8x128xf32>
    %cst_6 = arith.constant 1.000000e+00 : f32
    %10 = vector.broadcast %cst_6 : f32 to vector<8x128xf32>
    %11 = arith.addf %10, %9 : vector<8x128xf32>
    %12 = math.log %11 : vector<8x128xf32>
    %cst_7 = arith.constant 0.000000e+00 : f32
    %13 = vector.broadcast %cst_7 : f32 to vector<8x128xf32>
    %14 = arith.minimumf %3, %13 : vector<8x128xf32>
    %15 = arith.subf %14, %12 : vector<8x128xf32>
    %cst_8 = arith.constant 0.000000e+00 : f32
    %16 = vector.broadcast %cst_8 : f32 to vector<8x128xf32>
    %17 = arith.subf %16, %3 : vector<8x128xf32>
    %cst_9 = arith.constant 0.000000e+00 : f32
    %18 = vector.broadcast %cst_9 : f32 to vector<8x128xf32>
    %19 = arith.minimumf %17, %18 : vector<8x128xf32>
    %20 = arith.subf %19, %12 : vector<8x128xf32>
    %21 = math.exp %15 : vector<8x128xf32>
    %cst_10 = arith.constant 1.000000e+00 : f32
    %22 = vector.broadcast %cst_10 : f32 to vector<8x128xf32>
    %23 = arith.cmpf oeq, %4, %22 : vector<8x128xf32>
    %24 = arith.extui %23 : vector<8x128xi1> to vector<8x128xi32>
    %25 = arith.sitofp %24 : vector<8x128xi32> to vector<8x128xf32>
    %cst_11 = arith.constant 1.000000e+00 : f32
    %26 = vector.broadcast %cst_11 : f32 to vector<8x128xf32>
    %27 = arith.subf %26, %4 : vector<8x128xf32>
    %28 = arith.mulf %27, %27 : vector<8x128xf32>
    %29 = arith.mulf %28, %28 : vector<8x128xf32>
    %cst_12 = arith.constant 1.000000e+00 : f32
    %30 = vector.broadcast %cst_12 : f32 to vector<8x128xf32>
    %31 = arith.subf %30, %21 : vector<8x128xf32>
    %32 = arith.mulf %31, %31 : vector<8x128xf32>
    %33 = arith.mulf %15, %32 : vector<8x128xf32>
    %34 = arith.mulf %33, %25 : vector<8x128xf32>
    %35 = arith.mulf %21, %21 : vector<8x128xf32>
    %36 = arith.mulf %20, %35 : vector<8x128xf32>
    %37 = arith.mulf %36, %29 : vector<8x128xf32>
    %38 = arith.addf %34, %37 : vector<8x128xf32>
    %39 = arith.mulf %38, %5 : vector<8x128xf32>
    %40 = arith.mulf %25, %5 : vector<8x128xf32>
    %c0_13 = arith.constant 0 : index
    %c0_14 = arith.constant 0 : index
    %41 = vector.load %arg7[%c0_13, %c0_14] : memref<8x128xf32, #tpu.memory_space<vmem>>, vector<8x128xf32>
    %42 = vector.shape_cast %39 : vector<8x128xf32> to vector<1x8x128xf32>
    %cst_15 = arith.constant dense<0.000000e+00> : vector<8x128xf32>
    %43 = vector.multi_reduction <add>, %42, %cst_15 [0] : vector<1x8x128xf32> to vector<8x128xf32>
    %44 = arith.addf %41, %43 : vector<8x128xf32>
    %c0_16 = arith.constant 0 : index
    %c0_17 = arith.constant 0 : index
    %45 = vector.load %arg7[%c0_16, %c0_17] : memref<8x128xf32, #tpu.memory_space<vmem>>, vector<8x128xf32>
    tpu.vector_store %arg7[%c0_16, %c0_17], %44 {strides = array<i32>} : memref<8x128xf32, #tpu.memory_space<vmem>>, vector<8x128xf32>,
    %c0_18 = arith.constant 0 : index
    %c0_19 = arith.constant 0 : index
    %46 = vector.load %arg8[%c0_18, %c0_19] : memref<8x128xf32, #tpu.memory_space<vmem>>, vector<8x128xf32>
    %47 = vector.shape_cast %40 : vector<8x128xf32> to vector<1x8x128xf32>
    %cst_20 = arith.constant dense<0.000000e+00> : vector<8x128xf32>
    %48 = vector.multi_reduction <add>, %47, %cst_20 [0] : vector<1x8x128xf32> to vector<8x128xf32>
    %49 = arith.addf %46, %48 : vector<8x128xf32>
    %c0_21 = arith.constant 0 : index
    %c0_22 = arith.constant 0 : index
    %50 = vector.load %arg8[%c0_21, %c0_22] : memref<8x128xf32, #tpu.memory_space<vmem>>, vector<8x128xf32>
    tpu.vector_store %arg8[%c0_21, %c0_22], %49 {strides = array<i32>} : memref<8x128xf32, #tpu.memory_space<vmem>>, vector<8x128xf32>,
    %c0_i32_23 = arith.constant 0 : i32
    %51 = arith.cmpi eq, %arg1, %c0_i32_23 : i32
    %52 = arith.extui %51 : i1 to i32
    %c0_i32_24 = arith.constant 0 : i32
    %53 = arith.cmpi ne, %52, %c0_i32_24 : i32
    scf.if %53 {
      %c0_25 = arith.constant 0 : index
      %c0_26 = arith.constant 0 : index
      %54 = vector.load %arg7[%c0_25, %c0_26] : memref<8x128xf32, #tpu.memory_space<vmem>>, vector<8x128xf32>
      %55 = vector.shape_cast %54 : vector<8x128xf32> to vector<1x8x128xf32>
      %cst_27 = arith.constant dense<0.000000e+00> : vector<1xf32>
      %56 = vector.multi_reduction <add>, %55, %cst_27 [1, 2] : vector<1x8x128xf32> to vector<1xf32>
      %57 = vector.shape_cast %56 : vector<1xf32> to vector<1x1x1xf32>
      %58 = vector.extract %57[0, 0, 0] : f32 from vector<1x1x1xf32>
      %59 = vector.broadcast %58 : f32 to vector<1x1xf32>
      %60 = vector.shape_cast %59 : vector<1x1xf32> to vector<1x1x1xf32>
      %c0_28 = arith.constant 0 : index
      %c0_29 = arith.constant 0 : index
      %c0_30 = arith.constant 0 : index
      %61 = vector.load %arg5[%c0_28, %c0_29, %c0_30] : memref<1x1x1xf32, #tpu.memory_space<vmem>>, vector<1x1x1xf32>
      tpu.vector_store %arg5[%c0_28, %c0_29, %c0_30], %60 {strides = array<i32>} : memref<1x1x1xf32, #tpu.memory_space<vmem>>, vector<1x1x1xf32>,
      %c0_31 = arith.constant 0 : index
      %c0_32 = arith.constant 0 : index
      %62 = vector.load %arg8[%c0_31, %c0_32] : memref<8x128xf32, #tpu.memory_space<vmem>>, vector<8x128xf32>
      %63 = vector.shape_cast %62 : vector<8x128xf32> to vector<1x8x128xf32>
      %cst_33 = arith.constant dense<0.000000e+00> : vector<1xf32>
      %64 = vector.multi_reduction <add>, %63, %cst_33 [1, 2] : vector<1x8x128xf32> to vector<1xf32>
      %65 = vector.shape_cast %64 : vector<1xf32> to vector<1x1x1xf32>
      %66 = vector.extract %65[0, 0, 0] : f32 from vector<1x1x1xf32>
      %67 = vector.broadcast %66 : f32 to vector<1x1xf32>
      %68 = vector.shape_cast %67 : vector<1x1xf32> to vector<1x1x1xf32>
      %c0_34 = arith.constant 0 : index
      %c0_35 = arith.constant 0 : index
      %c0_36 = arith.constant 0 : index
      %69 = vector.load %arg6[%c0_34, %c0_35, %c0_36] : memref<1x1x1xf32, #tpu.memory_space<vmem>>, vector<1x1x1xf32>
      tpu.vector_store %arg6[%c0_34, %c0_35, %c0_36], %68 {strides = array<i32>} : memref<1x1x1xf32, #tpu.memory_space<vmem>>, vector<1x1x1xf32>,
    } else {
    }
    return
  }
  func.func @transform_0(%arg0: i32, %arg1: i32) -> (i32, i32) {
    %c1_i32 = arith.constant 1 : i32
    %0 = arith.muli %arg0, %c1_i32 : i32
    %1 = arith.addi %0, %arg1 : i32
    %c0_i32 = arith.constant 0 : i32
    %c0_i32_0 = arith.constant 0 : i32
    return %1, %c0_i32 : i32, i32
  }
  func.func @transform_1(%arg0: i32, %arg1: i32) -> (i32, i32) {
    %c1_i32 = arith.constant 1 : i32
    %0 = arith.muli %arg0, %c1_i32 : i32
    %1 = arith.addi %0, %arg1 : i32
    %c0_i32 = arith.constant 0 : i32
    %c0_i32_0 = arith.constant 0 : i32
    return %1, %c0_i32 : i32, i32
  }
  func.func @transform_2(%arg0: i32, %arg1: i32) -> (i32, i32) {
    %c1_i32 = arith.constant 1 : i32
    %0 = arith.muli %arg0, %c1_i32 : i32
    %1 = arith.addi %0, %arg1 : i32
    %c0_i32 = arith.constant 0 : i32
    %c0_i32_0 = arith.constant 0 : i32
    return %1, %c0_i32 : i32, i32
  }
  func.func @transform_3(%arg0: i32, %arg1: i32) -> (i32, i32, i32) {
    %c0_i32 = arith.constant 0 : i32
    %c0_i32_0 = arith.constant 0 : i32
    %c0_i32_1 = arith.constant 0 : i32
    return %arg0, %c0_i32, %c0_i32_0 : i32, i32, i32
  }
  func.func @transform_4(%arg0: i32, %arg1: i32) -> (i32, i32, i32) {
    %c0_i32 = arith.constant 0 : i32
    %c0_i32_0 = arith.constant 0 : i32
    %c0_i32_1 = arith.constant 0 : i32
    return %arg0, %c0_i32, %c0_i32_0 : i32, i32, i32
  }
}

</mosaic_0001>

<bundles_post_ra>
// kernel: tpu_custom_call.1
= control target key start
LH: loop header
LB: loop body
LE: loop exit
PB: predicated region body
PF: predicated region fallthrough
CT: control target
= control target key end

     0   :  { %s920_s0 = inlined_call_operand.hbm [shape: f32[16,128], index: 0, kind: input, shape index: {}]   ;;  %s921_s1 = inlined_call_operand.hbm [shape: f32[16,128], index: 1, kind: input, shape index: {}]   ;;  %s922_s2 = inlined_call_operand.hbm [shape: f32[16,128], index: 2, kind: input, shape index: {}]   ;;  %s923_s3 = inlined_call_operand.vmem [shape: f32[2,1,1], index: 3, kind: output, shape index: {0}]   ;;  %s924_s4 = inlined_call_operand.vmem [shape: f32[2,1,1], index: 4, kind: output, shape index: {1}]  }
   0x1   :  { %926 = sst [smem:[#allocation11_spill]] %s921_s1 }
   0x2   :  { %10 = vsyncpa [#allocation5], 0 }
   0x3   :  { %12 = vsyncpa [#allocation5 + $0x1], 0 }
   0x4   :  { %13 = vsyncpa [#allocation7], 0 }
   0x5   :  { %15 = vsyncpa [#allocation7 + $0x1], 0  ;;  %s799_s15 = smov 0   ;;  %s801_s16 = smov 0  }
   0x6   :  { %s803_s17 = smov 0   ;;  %s805_s18 = smov 0  }
   0x7   :  { %s807_s19 = smov 0   ;;  %s809_s20 = smov 0  }
   0x8 LB: > { %s925_s21 = sadd.s32 4294967295, %s771_s20   ;;  %s33_s22 = sadd.s32 1, %s767_s19  ;;  %s771_s20 = sphi %s809_s20, %s21_s20   ;;  %s767_s19 = sphi %s807_s19, %s936_s19   ;;  %s763_s18 = sphi %s805_s18, %s935_s18   ;;  %s759_s17 = sphi %s803_s17, %s934_s17   ;;  %s755_s16 = sphi %s801_s16, %s933_s16   ;;  %s751_s15 = sphi %s799_s15, %s932_s15  }
   0x9   : > { %p35_p0 = scmp.ge.s32.totalorder %s33_s22, 2  ;;  %s42_s23 = sadd.s32 1, %s759_s17 }
   0xa   : > { %p49_p1 = scmp.ne.s32.totalorder %s759_s17, %s755_s16  ;;  %p50_p2 = scmp.eq.s32.totalorder %s771_s20, 0 }
   0xb   : > { %s938_s22 = smov (%p35_p0, %s33_s22), 0  ;;  %p55_p4 = scmp.ne.s32.totalorder %s755_s16, %s751_s15 }
   0xc   : > { %p51_p3 = por %p50_p2, %p49_p1  ;;  %s39_s24 = ssub.s32 %s767_s19, %s938_s22 }
   0xd   : > { %p56_p5 = scmp.eq.s32.totalorder %s925_s21, 0  ;;  %p40_p6 = scmp.eq.s32.totalorder %s39_s24, 0 }
   0xe   : > { %p571_p8 = scmp.lt.s32.totalorder %s771_s20, 2  ;;  %s187_s27 = sand.u32 1, %s759_s17  }
   0xf   : > { %p840_p7 = por %p56_p5, %p55_p4  ;;  %s539_s28 = sshll.u32 %s767_s19, 3 }
  0x10   : > { %s846_s26 = scalar_select %p40_p6, %s759_s17, %s42_s23  }
  0x11   : > { %s538_s29 = sshll.u32 %s187_s27, 3  ;;  %p850_p9 = pnand %p571_p8, %p51_p3 }
  0x12   : > { %s207_s5 = sand.u32 1, %s771_s20   ;;  %s929_s1 = sld [smem:[#allocation11_spill]] }
  0x13   : > { %s211_s9 = scalar_lea.vmem [#allocation6], %s538_s29  ;;  %p544_p10 = scmp.ge.s32.totalorder %s771_s20, 1 }
  0x14   : > { %s220_s10 = sshll.u32 %s211_s9, 4  ;;  %s208_s12 = scalar_lea.sflag [#allocation7], %s207_s5  ;;  %s221_s10 = int_to_ptr.vmem [resolvable:$true] %s220_s10 }
  0x15   : > { %p245_p11 = scmp.lt.s32.totalorder %s771_s20, 3  ;;  %s196_s23 = scalar_lea.hbm %s920_s0, %s539_s28 }
  0x16   : > { %s191_s24 = scalar_lea.vmem [#allocation4], %s538_s29  ;;  %s198_s7 = sshll.u32 %s196_s23, 4  ;;  %s199_s7 = int_to_ptr.hbm [resolvable:$true] %s198_s7 }
  0x17   : > { %p862_p12 = pnand %p544_p10, %p245_p11  ;;  %s200_s6 = sshll.u32 %s191_s24, 4  ;;  %s201_s6 = int_to_ptr.vmem [resolvable:$true] %s200_s6 }
  0x18   : > { %s216_s8 = scalar_lea.hbm %s929_s1, %s539_s28  ;;  %s251_s14 = sand.u32 (!%p862_p12), 1, %s755_s16  }
  0x19   : > { %s218_s11 = sshll.u32 %s216_s8, 4  ;;  %s188_s8 = scalar_lea.sflag [#allocation5], %s187_s27  ;;  %s219_s11 = int_to_ptr.hbm [resolvable:$true] %s218_s11 }
  0x1a   : > { %567 = dma.hbm_to_vmem [thread:$0]  (!%p850_p9), %s219_s11, 128, %s221_s10, %s208_s12  }
  0x1b   : > { %564 = dma.hbm_to_vmem [thread:$0]  (!%p850_p9), %s199_s7, 128, %s201_s6, %s188_s8  }
  0x1c   : > { %s236_s10 = scalar_lea.hbm %s922_s2, %s539_s28  ;;  %s231_s11 = scalar_lea.vmem [#allocation8], %s538_s29 }
  0x1d   : > { %s240_s21 = sshll.u32 %s231_s11, 4  ;;  %s238_s1 = sshll.u32 %s236_s10, 4  ;;  %s241_s21 = int_to_ptr.vmem [resolvable:$true] %s240_s21  ;;  %s239_s1 = int_to_ptr.hbm [resolvable:$true] %s238_s1 }
  0x1e   : > { %570 = dma.hbm_to_vmem [thread:$0]  (!%p850_p9), %s239_s1, 128, %s241_s21, %s208_s12  }
  0x1f   : > { %249 = sbr.rel (%p862_p12) target bundleno = 277 (0x115), region = 32  ;;  %s879_s27 = sshll.u32 (!%p862_p12), %s251_s14, 3 }
  0x20   : > { %s252_s15 = scalar_lea.sflag (!%p862_p12), [#allocation5], %s251_s14  ;;  %s255_s23 = scalar_lea.vmem (!%p862_p12), [#allocation4], %s879_s27 }
  0x24   : > { %742 = dma.done.wait (%p840_p7), %s252_s15, 128  }
  0x25   : > { %744 = vsyncadd (%p840_p7), %s252_s15, 4294967168  ;;  %s931_s28 = sadd.s32 4294967295, %s771_s20   ;;  %s265_s29 = scalar_lea.vmem [#allocation6], %s879_s27 }
  0x26   : > { %s261_s1 = sand.u32 1, %s931_s28  }
  0x27   : > { %s262_s21 = scalar_lea.sflag [#allocation7], %s261_s1 }
  0x28   : > { %746 = dma.done.wait (%p840_p7), %s262_s21, 256  }
  0x29   : > { %748 = vsyncadd (%p840_p7), %s262_s21, 4294967040  ;;  %v327_v0 = vld [vmem:[%s255_s23] sm:$0xff]  ;;  %v328_v9 = vld [vmem:[%s265_s29] sm:$0xff]  ;;  %v773_v23 = vmov 0.0   ;;  %s275_s25 = scalar_lea.vmem [#allocation8], %s879_s27  ;;  %p315_p13 = scmp.lt.s32.totalorder %s763_s18, 1 }
  0x2a   : > { %v330_v1 = vand.u32 2147483647, %v327_v0  ;;  %v337_v6 = vmin.f32 %v327_v0, 0.0  ;;  %v339_v11 = vsub.f32 0.0, %v327_v0  ;;  %v347_v13 = vsub.f32 1.0, %v328_v9  ;;  %v329_v28 = vld [vmem:[%s275_s25] sm:$0xff] }
  0x2b   : > { %vm344_vm0 = vcmp.eq.f32.partialorder %v328_v9, 1.0  ;;  %s940_s18 = smov (!%p315_p13, %s763_s18), 1  ;;  %vm382_vm1 = vcmask 0  }
  0x2c   : > { %v331_v2 = vsub.f32 0.0, %v330_v1  ;;  %v340_v14 = vmin.f32 %v339_v11, 0.0  ;;  %v348_v15 = vmul.f32 %v347_v13, %v347_v13  ;;  %v548_v24 = vsel %vm344_vm0, 1.0, %v773_v23  ;;  %s317_s13 = scalar_lea.vmem %s923_s3, %s940_s18  ;;  %s320_s8 = scalar_lea.vmem %s924_s4, %s940_s18 }
  0x2d   : > { %v359_v31 = vmul.f32 %v548_v24, %v329_v28 }
  0x2e   : > { %v332_v3 = vmul.f32 1.442695, %v331_v2  ;;  %v349_v18 = vmul.f32 %v348_v15, %v348_v15 }
  0x30   : > { %621 = vpow2.f32 %v332_v3 }
  0x36   : > { %v622_v4 = vpop.eup %621 }
  0x37   : > { %v334_v5 = vadd.f32 1.0, %v622_v4 }
  0x39   : > { %623 = vlog2.f32 %v334_v5 }
  0x3f   : > { %v624_v7 = vpop.eup %623 }
  0x40   : > { %v336_v8 = vmul.f32 0.6931472, %v624_v7 }
  0x42   : > { %v338_v10 = vsub.f32 %v337_v6, %v336_v8  ;;  %v341_v16 = vsub.f32 %v340_v14, %v336_v8 }
  0x44   : > { %v342_v12 = vmul.f32 1.442695, %v338_v10 }
  0x46   : > { %625 = vpow2.f32 %v342_v12 }
  0x4c   : > { %v626_v17 = vpop.eup %625 }
  0x4d   : > { %v350_v19 = vsub.f32 1.0, %v626_v17  ;;  %v354_v20 = vmul.f32 %v626_v17, %v626_v17 }
  0x4f   : > { %v351_v21 = vmul.f32 %v350_v19, %v350_v19  ;;  %v355_v22 = vmul.f32 %v354_v20, %v341_v16 }
  0x51   : > { %v352_v25 = vmul.f32 %v351_v21, %v338_v10  ;;  %v356_v26 = vmul.f32 %v355_v22, %v349_v18 }
  0x53   : > { %v353_v27 = vmul.f32 %v548_v24, %v352_v25 }
  0x55   : > { %v357_v29 = vadd.f32 %v356_v26, %v353_v27 }
  0x57   : > { %v358_v30 = vmul.f32 %v357_v29, %v329_v28 }
  0x59   : > { %372 = vadd.xlane.f32.xlu0 %v358_v30 }
  0x61   : > { %385 = vadd.xlane.f32.xlu0 %v359_v31 }
  0xcc   : > { %v373_v32 = vpop.xlane.xlu0 %372 }
  0xcd   : > { %v374_v33 = vrot.slane %v373_v32, 4 }
  0xcf   : > { %v375_v34 = vadd.f32 %v374_v33, %v373_v32 }
  0xd1   : > { %v376_v35 = vrot.slane %v375_v34, 2 }
  0xd3   : > { %v377_v36 = vadd.f32 %v376_v35, %v375_v34 }
  0xd4   : > { %v386_v37 = vpop.xlane.xlu0 %385 }
  0xd5   : > { %v387_v38 = vrot.slane %v386_v37, 4  ;;  %v378_v39 = vrot.slane %v377_v36, 1 }
  0xd7   : > { %v388_v40 = vadd.f32 %v387_v38, %v386_v37  ;;  %v379_v41 = vadd.f32 %v378_v39, %v377_v36 }
  0xd9   : > { %v389_v42 = vrot.slane %v388_v40, 2  ;;  %551 = vpush %v379_v41 }
  0xdb   : > { %v390_v43 = vadd.f32 %v389_v42, %v388_v40 }
  0xdd   : > { %v391_v44 = vrot.slane %v390_v43, 1 }
  0xdf   : > { %v392_v45 = vadd.f32 %v391_v44, %v390_v43 }
  0xe1   : > { %553 = vpush %v392_v45 }
 0x10a   : > { %s552_s24 = spop %551 }
 0x10b   : > { %v381_v46 = vstv %s552_s24 }
 0x10c   : > { %383 = vst.msk [vmem:[%s317_s13] sm:$0x1] %vm382_vm1, %v381_v46 }
 0x112   : > { %s554_s5 = spop %553 }
 0x113   : > { %v394_v47 = vstv %s554_s5 }
 0x114   : > { %395 = vst.msk [vmem:[%s320_s8] sm:$0x1] %vm382_vm1, %v394_v47 }
 0x115 PF: > { %s21_s20 = sadd.s32 1, %s771_s20   ;;  %s932_s15 = smov %s755_s16 }
 0x116   : > { %p18_p0 = scmp.ge.s32.totalorder %s21_s20, 4   ;;  %s933_s16 = smov %s759_s17 }
 0x117   : > { %s934_s17 = smov %s846_s26  ;;  %s935_s18 = smov %s767_s19 }
 0x118   : > { %s936_s19 = smov %s938_s22  ;;  %20 = sbr.rel (!%p18_p0) target bundleno = 8 (0x8), region = 116 }
 0x11d   :  { %425 = vsyncpa [#allocation5], 1 }
 0x11e   :  { %427 = vsyncpa [#allocation5 + $0x1], 1 }
 0x11f   :  { %428 = vsyncpa [#allocation7], 1 }
 0x120   :  { %430 = vsyncpa [#allocation7 + $0x1], 1 }

</bundles_post_ra>
